<compile_context>
chip_gen: v7x
topology: tpu7x:2x2x1
jax: 0.10.0
libtpu: 0.0.40
codegen_flags: <defaults>
</compile_context>

<pallas_src>
import jax
import jax.numpy as jnp
from jax.experimental import pallas as pl
from jax.experimental.pallas import tpu as pltpu

D_IN = 28 * 28        # 784
H1 = 512
H2 = 256
D_OUT = 10
D_OUT_PAD = 128       # lane-dense padded output width
TB_CAP = 512          # safe on v5e's 16 MiB scoped-VMEM default; good amortization on v6e/v7x


def _round_up(x, m):
    return ((x + m - 1) // m) * m


def _choose_tb(B):
    """Batch tile rows: full batch for tiny B (block == full dim is always legal);
    otherwise a multiple of 8, capped at TB_CAP, and sized so n_tiles >= 2 (v7x megacore)."""
    if B <= 16:
        return B
    half = -(-B // 2)
    return min(TB_CAP, _round_up(half, 8))


def _mlp_kernel(x_ref, w1_ref, b1_ref, w2_ref, b2_ref, w3_ref, b3_ref, o_ref):
    # x arrives f32 straight from HBM; cast to bf16 on the VPU right before the MXU.
    x = x_ref[...].astype(jnp.bfloat16)
    # Layer 1: (TB,784)bf16 @ (784,512)bf16 -> f32 acc, +bias, ReLU
    h1 = jnp.dot(x, w1_ref[...], preferred_element_type=jnp.float32)
    h1 = jnp.maximum(h1 + b1_ref[...], 0.0).astype(jnp.bfloat16)
    # Layer 2: (TB,512)bf16 @ (512,256)bf16 -> f32 acc, +bias, ReLU
    h2 = jnp.dot(h1, w2_ref[...], preferred_element_type=jnp.float32)
    h2 = jnp.maximum(h2 + b2_ref[...], 0.0).astype(jnp.bfloat16)
    # Layer 3: (TB,256)bf16 @ (256,128)bf16 -> f32 logits, stored bf16 (padded lanes)
    logits = jnp.dot(h2, w3_ref[...], preferred_element_type=jnp.float32)
    o_ref[...] = (logits + b3_ref[...]).astype(o_ref.dtype)


def lln_forward(x_nchw, prepared_params):
    """x_nchw: (B, 1, 28, 28) float32.  Returns logits (B, 10) float32."""
    w1, b1, w2, b2, w3, b3 = prepared_params   # bf16 weights (layer 3 padded to 128), f32 biases
    B = x_nchw.shape[0]

    # nn.Flatten(): metadata-only row-major reshape; stays f32 (cast happens in-kernel).
    x = x_nchw.reshape(B, D_IN)

    TB = _choose_tb(B)
    n_tiles = pl.cdiv(B, TB)   # ragged last tile: OOB output rows are masked by Pallas

    # Constant index_map => same block every step => weights/biases resident in VMEM.
    # (Default double-buffering of these constant blocks costs ~1.1 MB extra VMEM; the
    #  working set at TB=512 still sits well inside every generation's budget.)
    def resident(arr):
        return pl.BlockSpec(arr.shape, lambda i: (0, 0))

    flops = 2 * B * (D_IN * H1 + H1 * H2 + H2 * D_OUT_PAD)
    bytes_accessed = (
        x.size * 4                                       # f32 activations in
        + (w1.size + w2.size + w3.size) * 2              # bf16 weights (fetched once)
        + (b1.size + b2.size + b3.size) * 4              # f32 biases
        + B * D_OUT_PAD * 2                              # bf16 logits out
    )

    out = pl.pallas_call(
        _mlp_kernel,
        out_shape=jax.ShapeDtypeStruct((B, D_OUT_PAD), jnp.bfloat16),
        grid_spec=pl.GridSpec(
            grid=(n_tiles,),
            in_specs=[
                pl.BlockSpec((TB, D_IN), lambda i: (i, 0)),   # x: streamed per batch tile
                resident(w1), resident(b1),
                resident(w2), resident(b2),
                resident(w3), resident(b3),
            ],
            out_specs=pl.BlockSpec((TB, D_OUT_PAD), lambda i: (i, 0)),
        ),
        compiler_params=pltpu.CompilerParams(
            dimension_semantics=("parallel",),                # megacore sharding on v7x
        ),
        cost_estimate=pl.CostEstimate(
            flops=flops, transcendentals=0, bytes_accessed=bytes_accessed
        ),
    )(x, w1, b1, w2, b2, w3, b3)

    # Only the 10 real lanes; tiny slice cast back to f32 for the module interface.
    return out[:, :D_OUT].astype(jnp.float32)


def init_params(key):
    """Deterministic init mirroring nn.Linear's default U(-1/sqrt(fan_in), +1/sqrt(fan_in)).
    Weights stored transposed relative to PyTorch: (in_features, out_features), f32."""
    dims = [(D_IN, H1), (H1, H2), (H2, D_OUT)]
    params = []
    for fan_in, fan_out in dims:
        key, kw, kb = jax.random.split(key, 3)
        bound = 1.0 / (fan_in ** 0.5)
        w = jax.random.uniform(kw, (fan_in, fan_out), jnp.float32, -bound, bound)
        b = jax.random.uniform(kb, (1, fan_out), jnp.float32, -bound, bound)
        params += [w, b]
    return tuple(params)


def prepare_params(params):
    """One-time prep: cast weights to bf16, keep biases f32, zero-pad layer 3 from 10 -> 128."""
    w1, b1, w2, b2, w3, b3 = params
    w3p = jnp.zeros((H2, D_OUT_PAD), jnp.float32).at[:, :D_OUT].set(w3)
    b3p = jnp.zeros((1, D_OUT_PAD), jnp.float32).at[:, :D_OUT].set(b3)
    return (
        w1.astype(jnp.bfloat16), b1.astype(jnp.float32),
        w2.astype(jnp.bfloat16), b2.astype(jnp.float32),
        w3p.astype(jnp.bfloat16), b3p.astype(jnp.float32),
    )


def _reference(x_nchw, prepared_params):
    """Pure-JAX reference on the same bf16-weight / f32-accumulate / bf16-store path."""
    w1, b1, w2, b2, w3, b3 = prepared_params
    x = x_nchw.reshape(x_nchw.shape[0], -1).astype(jnp.bfloat16)
    h1 = jnp.maximum(jnp.dot(x, w1, preferred_element_type=jnp.float32) + b1, 0.0)
    h1 = h1.astype(jnp.bfloat16)
    h2 = jnp.maximum(jnp.dot(h1, w2, preferred_element_type=jnp.float32) + b2, 0.0)
    h2 = h2.astype(jnp.bfloat16)
    out = (jnp.dot(h2, w3, preferred_element_type=jnp.float32) + b3).astype(jnp.bfloat16)
    return out[:, :D_OUT].astype(jnp.float32)


if __name__ == "__main__":
    key = jax.random.PRNGKey(0)
    k_x, k_p = jax.random.split(key)
    params = prepare_params(init_params(k_p))

    # MNIST-like NCHW input at small batch (single-tile path).
    x = jax.random.normal(k_x, (8, 1, 28, 28), jnp.float32)
    logits = lln_forward(x, params)
    jax.block_until_ready(logits)
    ref = _reference(x, params)
    assert logits.shape == (8, D_OUT)
    assert jnp.allclose(logits, ref, atol=1e-2, rtol=1e-2), (
        float(jnp.max(jnp.abs(logits - ref)))
    )

    # Multi-tile + ragged-last-tile path (exercises masked boundary writes, n_tiles=2).
    x2 = jax.random.normal(k_x, (40, 1, 28, 28), jnp.float32)
    logits2 = lln_forward(x2, params)
    jax.block_until_ready(logits2)
    ref2 = _reference(x2, params)
    assert logits2.shape == (40, D_OUT)
    assert jnp.allclose(logits2, ref2, atol=1e-2, rtol=1e-2), (
        float(jnp.max(jnp.abs(logits2 - ref2)))
    )

    print("KERNEL_OK")
</pallas_src>

<mosaic_0001>
module attributes {stable_mosaic.version = 11 : i64} {
  func.func @_mlp_kernel(%arg0: i32, %arg1: memref<8x784xf32, #tpu.memory_space<vmem>>, %arg2: memref<784x512xbf16, #tpu.memory_space<vmem>>, %arg3: memref<1x512xf32, #tpu.memory_space<vmem>>, %arg4: memref<512x256xbf16, #tpu.memory_space<vmem>>, %arg5: memref<1x256xf32, #tpu.memory_space<vmem>>, %arg6: memref<256x128xbf16, #tpu.memory_space<vmem>>, %arg7: memref<1x128xf32, #tpu.memory_space<vmem>>, %arg8: memref<8x128xbf16, #tpu.memory_space<vmem>>) attributes {dimension_semantics = [#tpu.dimension_semantics<parallel>], iteration_bounds = array<i64: 1>, scalar_prefetch = 0 : i64, scratch_operands = 0 : i64, tpu.core_type = #tpu.core_type<tc>, window_params = [{transform_indices = @transform_0, window_bounds = array<i64: 8, 784>}, {pipeline_mode = #tpu.pipeline_mode<synchronous>, transform_indices = @transform_1, window_bounds = array<i64: 784, 512>}, {pipeline_mode = #tpu.pipeline_mode<synchronous>, transform_indices = @transform_2, window_bounds = array<i64: 1, 512>}, {pipeline_mode = #tpu.pipeline_mode<synchronous>, transform_indices = @transform_3, window_bounds = array<i64: 512, 256>}, {pipeline_mode = #tpu.pipeline_mode<synchronous>, transform_indices = @transform_4, window_bounds = array<i64: 1, 256>}, {pipeline_mode = #tpu.pipeline_mode<synchronous>, transform_indices = @transform_5, window_bounds = array<i64: 256, 128>}, {pipeline_mode = #tpu.pipeline_mode<synchronous>, transform_indices = @transform_6, window_bounds = array<i64: 1, 128>}, {transform_indices = @transform_7, window_bounds = array<i64: 8, 128>}]} {
    %c0 = arith.constant 0 : index
    %c0_0 = arith.constant 0 : index
    %0 = vector.load %arg1[%c0, %c0_0] : memref<8x784xf32, #tpu.memory_space<vmem>>, vector<8x784xf32>
    %1 = arith.truncf %0 : vector<8x784xf32> to vector<8x784xbf16>
    %c0_1 = arith.constant 0 : index
    %c0_2 = arith.constant 0 : index
    %2 = vector.load %arg2[%c0_1, %c0_2] : memref<784x512xbf16, #tpu.memory_space<vmem>>, vector<784x512xbf16>
    %cst = arith.constant dense<0.000000e+00> : vector<8x512xf32>
    %3 = tpu.matmul %1, %2, %cst {dimension_numbers = #tpu.dot_dimension_numbers<[1], [0], [0], [1], [0, 0, 1, 1], [], []>} : vector<8x784xbf16>, vector<784x512xbf16>, vector<8x512xf32> -> vector<8x512xf32>
    %c0_3 = arith.constant 0 : index
    %c0_4 = arith.constant 0 : index
    %4 = vector.load %arg3[%c0_3, %c0_4] : memref<1x512xf32, #tpu.memory_space<vmem>>, vector<1x512xf32>
    %5 = vector.broadcast %4 : vector<1x512xf32> to vector<8x512xf32>
    %6 = arith.addf %3, %5 : vector<8x512xf32>
    %cst_5 = arith.constant 0.000000e+00 : f32
    %7 = vector.broadcast %cst_5 : f32 to vector<8x512xf32>
    %8 = arith.maximumf %6, %7 : vector<8x512xf32>
    %9 = arith.truncf %8 : vector<8x512xf32> to vector<8x512xbf16>
    %c0_6 = arith.constant 0 : index
    %c0_7 = arith.constant 0 : index
    %10 = vector.load %arg4[%c0_6, %c0_7] : memref<512x256xbf16, #tpu.memory_space<vmem>>, vector<512x256xbf16>
    %cst_8 = arith.constant dense<0.000000e+00> : vector<8x256xf32>
    %11 = tpu.matmul %9, %10, %cst_8 {dimension_numbers = #tpu.dot_dimension_numbers<[1], [0], [0], [1], [0, 0, 1, 1], [], []>} : vector<8x512xbf16>, vector<512x256xbf16>, vector<8x256xf32> -> vector<8x256xf32>
    %c0_9 = arith.constant 0 : index
    %c0_10 = arith.constant 0 : index
    %12 = vector.load %arg5[%c0_9, %c0_10] : memref<1x256xf32, #tpu.memory_space<vmem>>, vector<1x256xf32>
    %13 = vector.broadcast %12 : vector<1x256xf32> to vector<8x256xf32>
    %14 = arith.addf %11, %13 : vector<8x256xf32>
    %cst_11 = arith.constant 0.000000e+00 : f32
    %15 = vector.broadcast %cst_11 : f32 to vector<8x256xf32>
    %16 = arith.maximumf %14, %15 : vector<8x256xf32>
    %17 = arith.truncf %16 : vector<8x256xf32> to vector<8x256xbf16>
    %c0_12 = arith.constant 0 : index
    %c0_13 = arith.constant 0 : index
    %18 = vector.load %arg6[%c0_12, %c0_13] : memref<256x128xbf16, #tpu.memory_space<vmem>>, vector<256x128xbf16>
    %cst_14 = arith.constant dense<0.000000e+00> : vector<8x128xf32>
    %19 = tpu.matmul %17, %18, %cst_14 {dimension_numbers = #tpu.dot_dimension_numbers<[1], [0], [0], [1], [0, 0, 1, 1], [], []>} : vector<8x256xbf16>, vector<256x128xbf16>, vector<8x128xf32> -> vector<8x128xf32>
    %c0_15 = arith.constant 0 : index
    %c0_16 = arith.constant 0 : index
    %20 = vector.load %arg7[%c0_15, %c0_16] : memref<1x128xf32, #tpu.memory_space<vmem>>, vector<1x128xf32>
    %21 = vector.broadcast %20 : vector<1x128xf32> to vector<8x128xf32>
    %22 = arith.addf %19, %21 : vector<8x128xf32>
    %23 = arith.truncf %22 : vector<8x128xf32> to vector<8x128xbf16>
    %c0_17 = arith.constant 0 : index
    %c0_18 = arith.constant 0 : index
    %24 = vector.load %arg8[%c0_17, %c0_18] : memref<8x128xbf16, #tpu.memory_space<vmem>>, vector<8x128xbf16>
    tpu.vector_store %arg8[%c0_17, %c0_18], %23 {strides = array<i32>} : memref<8x128xbf16, #tpu.memory_space<vmem>>, vector<8x128xbf16>,
    return
  }
  func.func @transform_0(%arg0: i32) -> (i32, i32) {
    %c0_i32 = arith.constant 0 : i32
    %c0_i32_0 = arith.constant 0 : i32
    return %arg0, %c0_i32 : i32, i32
  }
  func.func @transform_1(%arg0: i32) -> (i32, i32) {
    %c0_i32 = arith.constant 0 : i32
    %c0_i32_0 = arith.constant 0 : i32
    %c0_i32_1 = arith.constant 0 : i32
    return %c0_i32, %c0_i32_0 : i32, i32
  }
  func.func @transform_2(%arg0: i32) -> (i32, i32) {
    %c0_i32 = arith.constant 0 : i32
    %c0_i32_0 = arith.constant 0 : i32
    %c0_i32_1 = arith.constant 0 : i32
    return %c0_i32, %c0_i32_0 : i32, i32
  }
  func.func @transform_3(%arg0: i32) -> (i32, i32) {
    %c0_i32 = arith.constant 0 : i32
    %c0_i32_0 = arith.constant 0 : i32
    %c0_i32_1 = arith.constant 0 : i32
    return %c0_i32, %c0_i32_0 : i32, i32
  }
  func.func @transform_4(%arg0: i32) -> (i32, i32) {
    %c0_i32 = arith.constant 0 : i32
    %c0_i32_0 = arith.constant 0 : i32
    %c0_i32_1 = arith.constant 0 : i32
    return %c0_i32, %c0_i32_0 : i32, i32
  }
  func.func @transform_5(%arg0: i32) -> (i32, i32) {
    %c0_i32 = arith.constant 0 : i32
    %c0_i32_0 = arith.constant 0 : i32
    %c0_i32_1 = arith.constant 0 : i32
    return %c0_i32, %c0_i32_0 : i32, i32
  }
  func.func @transform_6(%arg0: i32) -> (i32, i32) {
    %c0_i32 = arith.constant 0 : i32
    %c0_i32_0 = arith.constant 0 : i32
    %c0_i32_1 = arith.constant 0 : i32
    return %c0_i32, %c0_i32_0 : i32, i32
  }
  func.func @transform_7(%arg0: i32) -> (i32, i32) {
    %c0_i32 = arith.constant 0 : i32
    %c0_i32_0 = arith.constant 0 : i32
    return %arg0, %c0_i32 : i32, i32
  }
}

</mosaic_0001>

<bundles_post_ra>
// kernel: tpu_custom_call.1
= control target key start
LH: loop header
LB: loop body
LE: loop exit
PB: predicated region body
PF: predicated region fallthrough
CT: control target
= control target key end

     0   :  { %12 = vsyncpa [#allocation3], 0  ;;  %s3347_s0 = inlined_call_operand.hbm [shape: f32[8,784], index: 0, kind: input, shape index: {}]   ;;  %s3348_s1 = inlined_call_operand.hbm [shape: bf16[784,512], index: 1, kind: input, shape index: {}]   ;;  %s3349_s2 = inlined_call_operand.vmem [shape: f32[1,512], index: 2, kind: input, shape index: {}]   ;;  %s3350_s3 = inlined_call_operand.hbm [shape: bf16[512,256], index: 3, kind: input, shape index: {}]   ;;  %s3351_s4 = inlined_call_operand.vmem [shape: f32[1,256], index: 4, kind: input, shape index: {}]   ;;  %s3352_s5 = inlined_call_operand.hbm [shape: bf16[256,128], index: 5, kind: input, shape index: {}]   ;;  %s3353_s6 = inlined_call_operand.vmem [shape: f32[1,128], index: 6, kind: input, shape index: {}]   ;;  %s3354_s7 = inlined_call_operand.hbm [shape: bf16[8,128], index: 7, kind: output, shape index: {}]  }
   0x1   :  { %13 = vsyncpa [#allocation6], 0 }
   0x2   :  { %14 = vsyncpa [#allocation9], 0 }
   0x3   :  { %15 = vsyncpa [#allocation4], 0  ;;  %s3176_s24 = smov [#allocation5]   ;;  %s3058_s28 = scalar_lea.hbm %s3348_s1, 25088 }
   0x4   :  { %s31_s25 = sshll.u32 %s3176_s24, 4  ;;  %p3059_p0 = scmp.ne.s32.totalorder %s3348_s1, %s3058_s28  ;;  %s32_s25 = int_to_ptr.vmem [resolvable:$true] %s31_s25 }
   0x5   :  { %p3062_p1 = scmp.lt.u32.totalorder %s3058_s28, %s3348_s1 }
   0x7   :  { %p3064_p2 = pnand %p3062_p1, %p3059_p0 }
   0x9   :  { %3067 = shalt.err (!%p3064_p2)
}
   0xa   :  { %s3068_s10 = scalar_lea.vmem %s32_s25, 25088  ;;  %p3073_p4 = scmp.lt.s32.totalorder %s32_s25, %s32_s25 }
   0xb   :  { %p3069_p3 = scmp.ne.s32.totalorder %s32_s25, %s3068_s10  ;;  %p3074_p5 = scmp.lt.s32.totalorder %s3068_s10, %s3068_s10 }
   0xd   :  { %p3075_p6 = por %p3074_p5, %p3073_p4 }
   0xf   :  { %p3076_p7 = pnand %p3075_p6, %p3069_p3 }
  0x11   :  { %3079 = shalt.err (!%p3076_p7)
}
  0x12   :  { %s3177_s11 = smov 256   ;;  %s3178_s12 = smov 16  }
  0x13   :  { %37 = dma.hbm_to_vmem [thread:$0]  %s3348_s1, 25088, %s32_s25, [#allocation6], %s3177_s11, %s3177_s11, %s3178_s12  }
  0x14   :  { %s3179_s15 = smov [#allocation2]   ;;  %s3180_s17 = smov [#allocation7]  }
  0x15   :  { %s22_s16 = sshll.u32 %s3179_s15, 4  ;;  %s45_s18 = sshll.u32 %s3180_s17, 4  ;;  %s23_s16 = int_to_ptr.vmem [resolvable:$true] %s22_s16  ;;  %s46_s18 = int_to_ptr.vmem [resolvable:$true] %s45_s18 }
  0x16   :  { %s3080_s21 = scalar_lea.hbm %s3347_s0, 896 }
  0x17   :  { %p3081_p8 = scmp.ne.s32.totalorder %s3347_s0, %s3080_s21  ;;  %p3084_p9 = scmp.lt.u32.totalorder %s3080_s21, %s3347_s0 }
  0x19   :  { %p3086_p10 = pnand %p3084_p9, %p3081_p8 }
  0x1b   :  { %3089 = shalt.err (!%p3086_p10)
}
  0x1c   :  { %s3090_s1 = scalar_lea.vmem %s23_s16, 896  ;;  %p3095_p12 = scmp.lt.s32.totalorder %s23_s16, %s23_s16 }
  0x1d   :  { %p3091_p11 = scmp.ne.s32.totalorder %s23_s16, %s3090_s1  ;;  %p3096_p13 = scmp.lt.s32.totalorder %s3090_s1, %s3090_s1 }
  0x1f   :  { %p3097_p0 = por %p3096_p13, %p3095_p12 }
  0x21   :  { %p3098_p1 = pnand %p3097_p0, %p3091_p11 }
  0x23   :  { %3101 = shalt.err (!%p3098_p1)
}
  0x24   :  { %25 = dma.hbm_to_vmem [thread:$0]  %s3347_s0, 896, %s23_s16, [#allocation3]  }
  0x25   :  { %s3102_s30 = scalar_lea.hbm %s3350_s3, 8192 }
  0x26   :  { %p3103_p2 = scmp.ne.s32.totalorder %s3350_s3, %s3102_s30  ;;  %p3106_p3 = scmp.lt.u32.totalorder %s3102_s30, %s3350_s3 }
  0x28   :  { %p3108_p4 = pnand %p3106_p3, %p3103_p2 }
  0x2a   :  { %3111 = shalt.err (!%p3108_p4)
}
  0x2b   :  { %s3112_s12 = scalar_lea.vmem %s46_s18, 8192  ;;  %p3117_p6 = scmp.lt.s32.totalorder %s46_s18, %s46_s18 }
  0x2c   :  { %p3113_p5 = scmp.ne.s32.totalorder %s46_s18, %s3112_s12  ;;  %p3118_p7 = scmp.lt.s32.totalorder %s3112_s12, %s3112_s12 }
  0x2e   :  { %p3119_p8 = por %p3118_p7, %p3117_p6 }
  0x30   :  { %p3120_p9 = pnand %p3119_p8, %p3113_p5 }
  0x32   :  { %3123 = shalt.err (!%p3120_p9)
}
  0x33   :  { %s3181_s0 = smov 128   ;;  %s3182_s13 = smov 8  }
  0x34   :  { %51 = dma.hbm_to_vmem [thread:$0]  %s3350_s3, 8192, %s46_s18, [#allocation6], %s3181_s0, %s3181_s0, %s3182_s13  }
  0x35   :  { %s3183_s16 = smov [#allocation8]   ;;  %s3124_s21 = scalar_lea.hbm %s3352_s5, 2048 }
  0x36   :  { %s59_s17 = sshll.u32 %s3183_s16, 4  ;;  %p3125_p10 = scmp.ne.s32.totalorder %s3352_s5, %s3124_s21  ;;  %s60_s17 = int_to_ptr.vmem [resolvable:$true] %s59_s17 }
  0x37   :  { %p3128_p11 = scmp.lt.u32.totalorder %s3124_s21, %s3352_s5 }
  0x39   :  { %p3130_p12 = pnand %p3128_p11, %p3125_p10 }
  0x3b   :  { %3133 = shalt.err (!%p3130_p12)
}
  0x3c   :  { %s3134_s1 = scalar_lea.vmem %s60_s17, 2048  ;;  %p3139_p0 = scmp.lt.s32.totalorder %s60_s17, %s60_s17 }
  0x3d   :  { %p3135_p13 = scmp.ne.s32.totalorder %s60_s17, %s3134_s1  ;;  %p3140_p1 = scmp.lt.s32.totalorder %s3134_s1, %s3134_s1 }
  0x3f   :  { %p3141_p2 = por %p3140_p1, %p3139_p0 }
  0x41   :  { %p3142_p3 = pnand %p3141_p2, %p3135_p13 }
  0x43   :  { %3145 = shalt.err (!%p3142_p3)
}
  0x44   :  { %s3184_s3 = smov 64   ;;  %s3185_s18 = smov 4  }
  0x45   :  { %65 = dma.hbm_to_vmem [thread:$0]  %s3352_s5, 2048, %s60_s17, [#allocation9], %s3184_s3, %s3184_s3, %s3185_s18  }
  0x46   :  { %3168 = dma.done.wait [#allocation3], 896  }
  0x47   :  { %3169 = vsyncadd [#allocation3], 4294966400 }
  0x48   :  { %3170 = dma.done.wait [#allocation6], 33280  }
  0x49   :  { %3171 = vsyncadd [#allocation6], 4294934016 }
  0x4a   :  { %3172 = dma.done.wait [#allocation9], 2048  }
  0x4b   :  { %3173 = vsyncadd [#allocation9], 4294965248  ;;  %v2652_v0 = vld [vmem:[#allocation5 + $0x4] ss:$16 sps:$4 sm:$0xff]   ;;  %v2656_v2 = vld [vmem:[#allocation5] ss:$16 sps:$4 sm:$0xff]  }
  0x4c   :  { %v2654_v1 = vld [vmem:[#allocation5 + $0x204] ss:$16 sps:$4 sm:$0xff]   ;;  %1297 = vmatprep.subr.bf16.mxu1 %v2652_v0  ;;  %v2657_v3 = vld [vmem:[#allocation5 + $0x200] ss:$16 sps:$4 sm:$0xff]   ;;  %vm1293_vm0 = vcmask 130048   ;;  %s3187_s8 = smov [#allocation10]  }
  0x4d   :  { %1338 = vmatprep.subr.bf16.mxu0 %v2654_v1  ;;  %v2658_v4 = vld [vmem:[#allocation5 + $0x24] ss:$16 sps:$4 sm:$0xff]   ;;  %1298 = vmatpush1.bf16.msra.mxu1 %v2656_v2  ;;  %v2662_v6 = vld [vmem:[#allocation5 + $0x20] ss:$16 sps:$4 sm:$0xff]   ;;  %s2298_s9 = sshll.u32 %s3187_s8, 4  ;;  %s2299_s9 = int_to_ptr.vmem [resolvable:$true] %s2298_s9 }
  0x4e   :  { %1339 = vmatpush1.bf16.msra.mxu0 %v2657_v3  ;;  %v2660_v5 = vld [vmem:[#allocation5 + $0x224] ss:$16 sps:$4 sm:$0xff]   ;;  %1299 = vmatprep.subr.bf16.mxu1 %v2658_v4  ;;  %v2663_v7 = vld [vmem:[#allocation5 + $0x220] ss:$16 sps:$4 sm:$0xff]   ;;  %v81_v4 = vld [vmem:[#allocation2] sm:$0xff]  ;;  %s3146_s10 = scalar_lea.vmem %s2299_s9, 64  ;;  %p3151_p5 = scmp.lt.s32.totalorder %s2299_s9, %s2299_s9 }
  0x4f   :  { %1340 = vmatprep.subr.bf16.mxu0 %v2660_v5  ;;  %v2664_v8 = vld [vmem:[#allocation5 + $0x44] ss:$16 sps:$4 sm:$0xff]   ;;  %v2668_v10 = vld [vmem:[#allocation5 + $0x40] ss:$16 sps:$4 sm:$0xff]   ;;  %p3147_p4 = scmp.ne.s32.totalorder %s2299_s9, %s3146_s10  ;;  %p3152_p6 = scmp.lt.s32.totalorder %s3146_s10, %s3146_s10 }
  0x50   :  { %v2666_v9 = vld [vmem:[#allocation5 + $0x244] ss:$16 sps:$4 sm:$0xff]   ;;  %v2669_v11 = vld [vmem:[#allocation5 + $0x240] ss:$16 sps:$4 sm:$0xff]  }
  0x51   :  { %1300 = vmatpush1.bf16.msra.mxu1 %v2662_v6  ;;  %v2670_v12 = vld [vmem:[#allocation5 + $0x64] ss:$16 sps:$4 sm:$0xff]   ;;  %v2674_v14 = vld [vmem:[#allocation5 + $0x60] ss:$16 sps:$4 sm:$0xff]   ;;  %v83_v6 = vld [vmem:[#allocation2 + $0x10] sm:$0xff]  ;;  %p3153_p7 = por %p3152_p6, %p3151_p5 }
  0x52   :  { %1341 = vmatpush1.bf16.msra.mxu0 %v2663_v7  ;;  %1301 = vmatprep.subr.bf16.mxu1 %v2664_v8  ;;  %v2672_v13 = vld [vmem:[#allocation5 + $0x264] ss:$16 sps:$4 sm:$0xff]   ;;  %v2675_v15 = vld [vmem:[#allocation5 + $0x260] ss:$16 sps:$4 sm:$0xff]   ;;  %v2753_v7 = vld [vmem:[#allocation5 + $0xc] ss:$16 sps:$4 sm:$0xff]   ;;  %v3282_v8 = vpack.c.bf16 %v81_v4, %v81_v4 }
  0x53   :  { %1342 = vmatprep.subr.bf16.mxu0 %v2666_v9  ;;  %v2676_v16 = vld [vmem:[#allocation5 + $0x84] ss:$16 sps:$4 sm:$0xff]   ;;  %v2680_v18 = vld [vmem:[#allocation5 + $0x80] ss:$16 sps:$4 sm:$0xff]   ;;  %v2837_v4 = vld [vmem:[#allocation5 + $0x1cc] ss:$16 sps:$4 sm:$0xff]   ;;  %p3154_p8 = pnand %p3153_p7, %p3147_p4 }
  0x54   :  { %v2678_v17 = vld [vmem:[#allocation5 + $0x284] ss:$16 sps:$4 sm:$0xff]   ;;  %v2681_v19 = vld [vmem:[#allocation5 + $0x280] ss:$16 sps:$4 sm:$0xff]  }
  0x55   :  { %1302 = vmatpush1.bf16.msra.mxu1 %v2668_v10  ;;  %v2682_v20 = vld [vmem:[#allocation5 + $0xa4] ss:$16 sps:$4 sm:$0xff]   ;;  %v2686_v22 = vld [vmem:[#allocation5 + $0xa0] ss:$16 sps:$4 sm:$0xff]   ;;  %v2751_v10 = vld [vmem:[#allocation5 + $0x8] ss:$16 sps:$4 sm:$0xff]  }
  0x56   :  { %1343 = vmatpush1.bf16.msra.mxu0 %v2669_v11  ;;  %1303 = vmatprep.subr.bf16.mxu1 %v2670_v12  ;;  %v2684_v21 = vld [vmem:[#allocation5 + $0x2a4] ss:$16 sps:$4 sm:$0xff]   ;;  %v2687_v23 = vld [vmem:[#allocation5 + $0x2a0] ss:$16 sps:$4 sm:$0xff]   ;;  %v3284_v11 = vpack.c.bf16 %v83_v6, %v83_v6  ;;  %v2835_v6 = vld [vmem:[#allocation5 + $0x1c8] ss:$16 sps:$4 sm:$0xff]  }
  0x57   :  { %1344 = vmatprep.subr.bf16.mxu0 %v2672_v13  ;;  %v2688_v24 = vld [vmem:[#allocation5 + $0xc4] ss:$16 sps:$4 sm:$0xff]   ;;  %v2692_v26 = vld [vmem:[#allocation5 + $0xc0] ss:$16 sps:$4 sm:$0xff]   ;;  %v2759_v13 = vld [vmem:[#allocation5 + $0x2c] ss:$16 sps:$4 sm:$0xff]  }
  0x58   :  { %v2690_v25 = vld [vmem:[#allocation5 + $0x2c4] ss:$16 sps:$4 sm:$0xff]   ;;  %v2693_v27 = vld [vmem:[#allocation5 + $0x2c0] ss:$16 sps:$4 sm:$0xff]  }
  0x59   :  { %1304 = vmatpush1.bf16.msra.mxu1 %v2674_v14  ;;  %v2694_v28 = vld [vmem:[#allocation5 + $0xe4] ss:$16 sps:$4 sm:$0xff]   ;;  %v2698_v30 = vld [vmem:[#allocation5 + $0xe0] ss:$16 sps:$4 sm:$0xff]  }
  0x5a   :  { %1345 = vmatpush1.bf16.msra.mxu0 %v2675_v15  ;;  %1305 = vmatprep.subr.bf16.mxu1 %v2676_v16  ;;  %v2696_v29 = vld [vmem:[#allocation5 + $0x2e4] ss:$16 sps:$4 sm:$0xff]   ;;  %v2699_v31 = vld [vmem:[#allocation5 + $0x2e0] ss:$16 sps:$4 sm:$0xff]   ;;  %v2757_v15 = vld [vmem:[#allocation5 + $0x28] ss:$16 sps:$4 sm:$0xff]  }
  0x5b   :  { %1346 = vmatprep.subr.bf16.mxu0 %v2678_v17  ;;  %v2700_v32 = vld [vmem:[#allocation5 + $0x104] ss:$16 sps:$4 sm:$0xff]   ;;  %v2704_v34 = vld [vmem:[#allocation5 + $0x100] ss:$16 sps:$4 sm:$0xff]   ;;  %v2765_v17 = vld [vmem:[#allocation5 + $0x4c] ss:$16 sps:$4 sm:$0xff]  }
  0x5c   :  { %v2702_v33 = vld [vmem:[#allocation5 + $0x304] ss:$16 sps:$4 sm:$0xff]   ;;  %v2705_v35 = vld [vmem:[#allocation5 + $0x300] ss:$16 sps:$4 sm:$0xff]  }
  0x5d   :  { %1306 = vmatpush1.bf16.msra.mxu1 %v2680_v18  ;;  %v2706_v36 = vld [vmem:[#allocation5 + $0x124] ss:$16 sps:$4 sm:$0xff]   ;;  %v2710_v38 = vld [vmem:[#allocation5 + $0x120] ss:$16 sps:$4 sm:$0xff]  }
  0x5e   :  { %1347 = vmatpush1.bf16.msra.mxu0 %v2681_v19  ;;  %1307 = vmatprep.subr.bf16.mxu1 %v2682_v20  ;;  %v2708_v37 = vld [vmem:[#allocation5 + $0x324] ss:$16 sps:$4 sm:$0xff]   ;;  %v2711_v39 = vld [vmem:[#allocation5 + $0x320] ss:$16 sps:$4 sm:$0xff]   ;;  %v2763_v19 = vld [vmem:[#allocation5 + $0x48] ss:$16 sps:$4 sm:$0xff]  }
  0x5f   :  { %1348 = vmatprep.subr.bf16.mxu0 %v2684_v21  ;;  %v2712_v40 = vld [vmem:[#allocation5 + $0x144] ss:$16 sps:$4 sm:$0xff]   ;;  %v2716_v42 = vld [vmem:[#allocation5 + $0x140] ss:$16 sps:$4 sm:$0xff]   ;;  %v2771_v21 = vld [vmem:[#allocation5 + $0x6c] ss:$16 sps:$4 sm:$0xff]  }
  0x60   :  { %v2714_v41 = vld [vmem:[#allocation5 + $0x344] ss:$16 sps:$4 sm:$0xff]   ;;  %v2717_v43 = vld [vmem:[#allocation5 + $0x340] ss:$16 sps:$4 sm:$0xff]  }
  0x61   :  { %1308 = vmatpush1.bf16.msra.mxu1 %v2686_v22  ;;  %v2718_v44 = vld [vmem:[#allocation5 + $0x164] ss:$16 sps:$4 sm:$0xff]   ;;  %v2722_v47 = vld [vmem:[#allocation5 + $0x160] ss:$16 sps:$4 sm:$0xff]  }
  0x62   :  { %1349 = vmatpush1.bf16.msra.mxu0 %v2687_v23  ;;  %1309 = vmatprep.subr.bf16.mxu1 %v2688_v24  ;;  %v2720_v45 = vld [vmem:[#allocation5 + $0x364] ss:$16 sps:$4 sm:$0xff]   ;;  %v2723_v50 = vld [vmem:[#allocation5 + $0x360] ss:$16 sps:$4 sm:$0xff]   ;;  %v2769_v23 = vld [vmem:[#allocation5 + $0x68] ss:$16 sps:$4 sm:$0xff]  }
  0x63   :  { %1350 = vmatprep.subr.bf16.mxu0 %v2690_v25  ;;  %v82_v46 = vld [vmem:[#allocation2 + $0x8] sm:$0xff]  ;;  %v84_v49 = vld [vmem:[#allocation2 + $0x18] sm:$0xff]  ;;  %v2777_v25 = vld [vmem:[#allocation5 + $0x8c] ss:$16 sps:$4 sm:$0xff]  }
  0x64   :  { %v3276_v48 = vpack.c.bf16 %v82_v46, %v82_v46  ;;  %v2724_v51 = vld [vmem:[#allocation5 + $0x184] ss:$16 sps:$4 sm:$0xff]   ;;  %v3278_v52 = vpack.c.bf16 %v84_v49, %v84_v49  ;;  %v2728_v54 = vld [vmem:[#allocation5 + $0x180] ss:$16 sps:$4 sm:$0xff]   ;;  %v2805_v49 = vld [vmem:[#allocation5 + $0x128] ss:$16 sps:$4 sm:$0xff]  }
  0x65   :  { %1310 = vmatpush1.bf16.msra.mxu1 %v2692_v26  ;;  %v2726_v53 = vld [vmem:[#allocation5 + $0x384] ss:$16 sps:$4 sm:$0xff]   ;;  %v2729_v55 = vld [vmem:[#allocation5 + $0x380] ss:$16 sps:$4 sm:$0xff]  }
  0x66   :  { %1351 = vmatpush1.bf16.msra.mxu0 %v2693_v27  ;;  %1311 = vmatprep.subr.bf16.mxu1 %v2694_v28  ;;  %v2730_v56 = vld [vmem:[#allocation5 + $0x1a4] ss:$16 sps:$4 sm:$0xff]   ;;  %v2734_v58 = vld [vmem:[#allocation5 + $0x1a0] ss:$16 sps:$4 sm:$0xff]   ;;  %v2775_v27 = vld [vmem:[#allocation5 + $0x88] ss:$16 sps:$4 sm:$0xff]  }
  0x67   :  { %1352 = vmatprep.subr.bf16.mxu0 %v2696_v29  ;;  %1329 = vmatprep.mubr.bf16.mxu1 %v3276_v48  ;;  %v2732_v57 = vld [vmem:[#allocation5 + $0x3a4] ss:$16 sps:$4 sm:$0xff]   ;;  %v2735_v59 = vld [vmem:[#allocation5 + $0x3a0] ss:$16 sps:$4 sm:$0xff]   ;;  %v2783_v29 = vld [vmem:[#allocation5 + $0xac] ss:$16 sps:$4 sm:$0xff]  }
  0x68   :  { %1370 = vmatprep.mubr.bf16.mxu0 %v3278_v52  ;;  %v2736_v60 = vld [vmem:[#allocation5 + $0x1c4] ss:$16 sps:$4 sm:$0xff]   ;;  %v2740_v62 = vld [vmem:[#allocation5 + $0x1c0] ss:$16 sps:$4 sm:$0xff]  }
  0x69   :  { %1312 = vmatpush1.bf16.msra.mxu1 %v2698_v30  ;;  %v2738_v61 = vld [vmem:[#allocation5 + $0x3c4] ss:$16 sps:$4 sm:$0xff]   ;;  %v2741_v63 = vld [vmem:[#allocation5 + $0x3c0] ss:$16 sps:$4 sm:$0xff]  }
  0x6a   :  { %1353 = vmatpush1.bf16.msra.mxu0 %v2699_v31  ;;  %1313 = vmatprep.subr.bf16.mxu1 %v2700_v32  ;;  %v2742_v0 = vld [vmem:[#allocation5 + $0x1e4] ss:$16 sps:$4 sm:$0xff]   ;;  %v2746_v2 = vld [vmem:[#allocation5 + $0x1e0] ss:$16 sps:$4 sm:$0xff]   ;;  %v2781_v31 = vld [vmem:[#allocation5 + $0xa8] ss:$16 sps:$4 sm:$0xff]  }
  0x6b   :  { %1354 = vmatprep.subr.bf16.mxu0 %v2702_v33  ;;  %v2744_v1 = vld [vmem:[#allocation5 + $0x3e4] ss:$16 sps:$4 sm:$0xff]   ;;  %v2747_v3 = vld [vmem:[#allocation5 + $0x3e0] ss:$16 sps:$4 sm:$0xff]   ;;  %v2789_v33 = vld [vmem:[#allocation5 + $0xcc] ss:$16 sps:$4 sm:$0xff]  }
  0x6c   :  { %v2750_v5 = vld [vmem:[#allocation5 + $0x404] ss:$16 sps:$4 sm:$0xff]   ;;  %v2748_v9 = vld [vmem:[#allocation5 + $0x400] ss:$16 sps:$4 sm:$0xff]  }
  0x6d   :  { %1314 = vmatpush1.bf16.msra.mxu1 %v2704_v34  ;;  %v2756_v12 = vld [vmem:[#allocation5 + $0x424] ss:$16 sps:$4 sm:$0xff]   ;;  %v2754_v14 = vld [vmem:[#allocation5 + $0x420] ss:$16 sps:$4 sm:$0xff]  }
  0x6e   :  { %1355 = vmatpush1.bf16.msra.mxu0 %v2705_v35  ;;  %1315 = vmatprep.subr.bf16.mxu1 %v2706_v36  ;;  %v2762_v16 = vld [vmem:[#allocation5 + $0x444] ss:$16 sps:$4 sm:$0xff]   ;;  %v2760_v18 = vld [vmem:[#allocation5 + $0x440] ss:$16 sps:$4 sm:$0xff]  }
  0x6f   :  { %1356 = vmatprep.subr.bf16.mxu0 %v2708_v37  ;;  %v2768_v20 = vld [vmem:[#allocation5 + $0x464] ss:$16 sps:$4 sm:$0xff]   ;;  %v2766_v22 = vld [vmem:[#allocation5 + $0x460] ss:$16 sps:$4 sm:$0xff]   ;;  %v2787_v37 = vld [vmem:[#allocation5 + $0xc8] ss:$16 sps:$4 sm:$0xff]  }
  0x70   :  { %v2774_v24 = vld [vmem:[#allocation5 + $0x484] ss:$16 sps:$4 sm:$0xff]   ;;  %v2772_v26 = vld [vmem:[#allocation5 + $0x480] ss:$16 sps:$4 sm:$0xff]  }
  0x71   :  { %1316 = vmatpush1.bf16.msra.mxu1 %v2710_v38  ;;  %v2780_v28 = vld [vmem:[#allocation5 + $0x4a4] ss:$16 sps:$4 sm:$0xff]   ;;  %v2778_v30 = vld [vmem:[#allocation5 + $0x4a0] ss:$16 sps:$4 sm:$0xff]  }
  0x72   :  { %1357 = vmatpush1.bf16.msra.mxu0 %v2711_v39  ;;  %1317 = vmatprep.subr.bf16.mxu1 %v2712_v40  ;;  %v2786_v32 = vld [vmem:[#allocation5 + $0x4c4] ss:$16 sps:$4 sm:$0xff]   ;;  %v2784_v36 = vld [vmem:[#allocation5 + $0x4c0] ss:$16 sps:$4 sm:$0xff]   ;;  %v2795_v39 = vld [vmem:[#allocation5 + $0xec] ss:$16 sps:$4 sm:$0xff]  }
  0x73   :  { %1358 = vmatprep.subr.bf16.mxu0 %v2714_v41  ;;  %v86_v34 = vld [vmem:[#allocation2 + $0x28] sm:$0xff]  ;;  %v2793_v41 = vld [vmem:[#allocation5 + $0xe8] ss:$16 sps:$4 sm:$0xff]  }
  0x74   :  { %v3289_v35 = vpack.c.bf16 %v86_v34, %v86_v34  ;;  %v2792_v38 = vld [vmem:[#allocation5 + $0x4e4] ss:$16 sps:$4 sm:$0xff]   ;;  %v2790_v40 = vld [vmem:[#allocation5 + $0x4e0] ss:$16 sps:$4 sm:$0xff]   ;;  %v2870_v34 = vld [vmem:[#allocation5 + $0x2ec] ss:$16 sps:$4 sm:$0xff]  }
  0x75   :  { %1318 = vmatpush1.bf16.msra.mxu1 %v2716_v42  ;;  %v2798_v42 = vld [vmem:[#allocation5 + $0x504] ss:$16 sps:$4 sm:$0xff]  }
  0x76   :  { %1359 = vmatpush1.bf16.msra.mxu0 %v2717_v43  ;;  %1319 = vmatprep.subr.bf16.mxu1 %v2718_v44  ;;  %v2801_v43 = vld [vmem:[#allocation5 + $0x10c] ss:$16 sps:$4 sm:$0xff]   ;;  %v2796_v44 = vld [vmem:[#allocation5 + $0x500] ss:$16 sps:$4 sm:$0xff]   ;;  %v2804_v46 = vld [vmem:[#allocation5 + $0x524] ss:$16 sps:$4 sm:$0xff]  }
  0x77   :  { %1360 = vmatprep.subr.bf16.mxu0 %v2720_v45  ;;  %v2799_v45 = vld [vmem:[#allocation5 + $0x108] ss:$16 sps:$4 sm:$0xff]  }
  0x79   :  { %1320 = vmatpush1.bf16.msra.mxu1 %v2722_v47  ;;  %v2807_v47 = vld [vmem:[#allocation5 + $0x12c] ss:$16 sps:$4 sm:$0xff]  }
  0x7a   :  { %1361 = vmatpush1.bf16.msra.mxu0 %v2723_v50  ;;  %1321 = vmatprep.subr.bf16.mxu1 %v2724_v51  ;;  %v2810_v50 = vld [vmem:[#allocation5 + $0x544] ss:$16 sps:$4 sm:$0xff]   ;;  %v2813_v51 = vld [vmem:[#allocation5 + $0x14c] ss:$16 sps:$4 sm:$0xff]  }
  0x7b   :  { %1362 = vmatprep.subr.bf16.mxu0 %v2726_v53  ;;  %v2808_v53 = vld [vmem:[#allocation5 + $0x540] ss:$16 sps:$4 sm:$0xff]  }
  0x7d   :  { %1322 = vmatpush1.bf16.msra.mxu1 %v2728_v54  ;;  %v2811_v54 = vld [vmem:[#allocation5 + $0x148] ss:$16 sps:$4 sm:$0xff]  }
  0x7e   :  { %1363 = vmatpush1.bf16.msra.mxu0 %v2729_v55  ;;  %1323 = vmatprep.subr.bf16.mxu1 %v2730_v56  ;;  %v2816_v55 = vld [vmem:[#allocation5 + $0x564] ss:$16 sps:$4 sm:$0xff]   ;;  %v2819_v56 = vld [vmem:[#allocation5 + $0x16c] ss:$16 sps:$4 sm:$0xff]  }
  0x7f   :  { %1364 = vmatprep.subr.bf16.mxu0 %v2732_v57  ;;  %v2814_v57 = vld [vmem:[#allocation5 + $0x560] ss:$16 sps:$4 sm:$0xff]  }
  0x81   :  { %1324 = vmatpush1.bf16.msra.mxu1 %v2734_v58  ;;  %v2817_v58 = vld [vmem:[#allocation5 + $0x168] ss:$16 sps:$4 sm:$0xff]  }
  0x82   :  { %1365 = vmatpush1.bf16.msra.mxu0 %v2735_v59  ;;  %1325 = vmatprep.subr.bf16.mxu1 %v2736_v60  ;;  %v2822_v59 = vld [vmem:[#allocation5 + $0x584] ss:$16 sps:$4 sm:$0xff]   ;;  %v2825_v60 = vld [vmem:[#allocation5 + $0x18c] ss:$16 sps:$4 sm:$0xff]  }
  0x83   :  { %1366 = vmatprep.subr.bf16.mxu0 %v2738_v61  ;;  %v2820_v61 = vld [vmem:[#allocation5 + $0x580] ss:$16 sps:$4 sm:$0xff]  }
  0x85   :  { %1326 = vmatpush1.bf16.msra.mxu1 %v2740_v62  ;;  %v2823_v62 = vld [vmem:[#allocation5 + $0x188] ss:$16 sps:$4 sm:$0xff]  }
  0x86   :  { %1367 = vmatpush1.bf16.msra.mxu0 %v2741_v63  ;;  %1327 = vmatprep.subr.bf16.mxu1 %v2742_v0  ;;  %v2828_v63 = vld [vmem:[#allocation5 + $0x5a4] ss:$16 sps:$4 sm:$0xff]   ;;  %v2831_v0 = vld [vmem:[#allocation5 + $0x1ac] ss:$16 sps:$4 sm:$0xff]  }
  0x87   :  { %1368 = vmatprep.subr.bf16.mxu0 %v2744_v1  ;;  %v2826_v1 = vld [vmem:[#allocation5 + $0x5a0] ss:$16 sps:$4 sm:$0xff]  }
  0x89   :  { %1328 = vmatpush1.bf16.msra.mxu1 %v2746_v2  ;;  %v2829_v2 = vld [vmem:[#allocation5 + $0x1a8] ss:$16 sps:$4 sm:$0xff]  }
  0x8a   :  { %1369 = vmatpush1.bf16.msra.mxu0 %v2747_v3  ;;  %1461 = vmatprep.subr.bf16.mxu1 %v2753_v7  ;;  %v2834_v3 = vld [vmem:[#allocation5 + $0x5c4] ss:$16 sps:$4 sm:$0xff]  }
  0x8b   :  { %1379 = vmatprep.subr.bf16.mxu0 %v2750_v5  ;;  %v2832_v5 = vld [vmem:[#allocation5 + $0x5c0] ss:$16 sps:$4 sm:$0xff]   ;;  %v2840_v7 = vld [vmem:[#allocation5 + $0x5e4] ss:$16 sps:$4 sm:$0xff]  }
  0x8c   :  { %1330 = vmatmul.mubr.bf16.vlgmr.msra.gmra.mrb[0].mxu1 %v3282_v8 }
  0x8d   :  { %1371 = vmatmul.mubr.bf16.vlgmr.msra.gmra.mrb[0].mxu0 %v3284_v11  ;;  %1462 = vmatpush1.bf16.msra.mxu1 %v2751_v10  ;;  %v2838_v10 = vld [vmem:[#allocation5 + $0x5e0] ss:$16 sps:$4 sm:$0xff]  }
  0x8e   :  { %1380 = vmatpush1.bf16.msra.mxu0 %v2748_v9  ;;  %1463 = vmatprep.subr.bf16.mxu1 %v2759_v13  ;;  %v2843_v9 = vld [vmem:[#allocation5 + $0x1ec] ss:$16 sps:$4 sm:$0xff]  }
  0x8f   :  { %1381 = vmatprep.subr.bf16.mxu0 %v2756_v12  ;;  %1493 = vmatprep.mubr.bf16.mxu1 %v3276_v48  ;;  %v2802_v48 = vld [vmem:[#allocation5 + $0x520] ss:$16 sps:$4 sm:$0xff]   ;;  %v2841_v12 = vld [vmem:[#allocation5 + $0x1e8] ss:$16 sps:$4 sm:$0xff]  }
  0x90   :  { %1411 = vmatprep.mubr.bf16.mxu0 %v3289_v35  ;;  %v85_v13 = vld [vmem:[#allocation2 + $0x20] sm:$0xff] }
  0x91   :  { %1464 = vmatpush1.bf16.msra.mxu1 %v2757_v15  ;;  %v2852_v15 = vld [vmem:[#allocation5 + $0x604] ss:$16 sps:$4 sm:$0xff]  }
  0x92   :  { %1382 = vmatpush1.bf16.msra.mxu0 %v2754_v14  ;;  %1465 = vmatprep.subr.bf16.mxu1 %v2765_v17  ;;  %v2846_v14 = vld [vmem:[#allocation5 + $0x20c] ss:$16 sps:$4 sm:$0xff]   ;;  %v2844_v17 = vld [vmem:[#allocation5 + $0x208] ss:$16 sps:$4 sm:$0xff]  }
  0x93   :  { %1383 = vmatprep.subr.bf16.mxu0 %v2762_v16  ;;  %v3292_v16 = vpack.c.bf16 %v85_v13, %v85_v13  ;;  %v2978_v13 = vld [vmem:[#allocation7 + $0xa4] ss:$8 sps:$4 sm:$0xff]  }
  0x95   :  { %1466 = vmatpush1.bf16.msra.mxu1 %v2763_v19  ;;  %v2849_v19 = vld [vmem:[#allocation5 + $0x22c] ss:$16 sps:$4 sm:$0xff]  }
  0x96   :  { %1384 = vmatpush1.bf16.msra.mxu0 %v2760_v18  ;;  %1467 = vmatprep.subr.bf16.mxu1 %v2771_v21  ;;  %v2850_v18 = vld [vmem:[#allocation5 + $0x600] ss:$16 sps:$4 sm:$0xff]   ;;  %v2847_v21 = vld [vmem:[#allocation5 + $0x228] ss:$16 sps:$4 sm:$0xff]  }
  0x97   :  { %1385 = vmatprep.subr.bf16.mxu0 %v2768_v20  ;;  %v2942_v20 = vld [vmem:[#allocation5 + $0x60c] ss:$16 sps:$4 sm:$0xff]  }
  0x99   :  { %1468 = vmatpush1.bf16.msra.mxu1 %v2769_v23  ;;  %v3186_v23 = vmov 0  }
  0x9a   :  { %1386 = vmatpush1.bf16.msra.mxu0 %v2766_v22  ;;  %1469 = vmatprep.subr.bf16.mxu1 %v2777_v25  ;;  %v2855_v22 = vld [vmem:[#allocation5 + $0x24c] ss:$16 sps:$4 sm:$0xff]  }
  0x9b   :  { %1387 = vmatprep.subr.bf16.mxu0 %v2774_v24  ;;  %v2853_v24 = vld [vmem:[#allocation5 + $0x248] ss:$16 sps:$4 sm:$0xff]  }
  0x9c   :  { %v87_v25 = vld [vmem:[#allocation2 + $0x30] sm:$0xff] }
  0x9d   :  { %1470 = vmatpush1.bf16.msra.mxu1 %v2775_v27  ;;  %v2856_v27 = vld [vmem:[#allocation5 + $0x268] ss:$16 sps:$4 sm:$0xff]  }
  0x9e   :  { %1388 = vmatpush1.bf16.msra.mxu0 %v2772_v26  ;;  %1471 = vmatprep.subr.bf16.mxu1 %v2783_v29  ;;  %v2858_v26 = vld [vmem:[#allocation5 + $0x26c] ss:$16 sps:$4 sm:$0xff]   ;;  %v94_v29 = vpack.c.bf16 %v87_v25, %v87_v25  ;;  %v2982_v25 = vld [vmem:[#allocation7 + $0xc0] ss:$8 sps:$4 sm:$0xff]  }
  0x9f   :  { %1389 = vmatprep.subr.bf16.mxu0 %v2780_v28  ;;  %v2940_v28 = vld [vmem:[#allocation5 + $0x608] ss:$16 sps:$4 sm:$0xff]  }
  0xa1   :  { %1472 = vmatpush1.bf16.msra.mxu1 %v2781_v31  ;;  %v2864_v31 = vld [vmem:[#allocation5 + $0x2ac] ss:$16 sps:$4 sm:$0xff]  }
  0xa2   :  { %1390 = vmatpush1.bf16.msra.mxu0 %v2778_v30  ;;  %1473 = vmatprep.subr.bf16.mxu1 %v2789_v33  ;;  %v2859_v30 = vld [vmem:[#allocation5 + $0x288] ss:$16 sps:$4 sm:$0xff]  }
  0xa3   :  { %1391 = vmatprep.subr.bf16.mxu0 %v2786_v32  ;;  %v2862_v32 = vld [vmem:[#allocation5 + $0x2a8] ss:$16 sps:$4 sm:$0xff]  }
  0xa4   :  { %v2865_v33 = vld [vmem:[#allocation5 + $0x2c8] ss:$16 sps:$4 sm:$0xff]  }
  0xa5   :  { %1474 = vmatpush1.bf16.msra.mxu1 %v2787_v37  ;;  %v2948_v37 = vld [vmem:[#allocation7 + $0x4] ss:$8 sps:$4 sm:$0xff]  }
  0xa6   :  { %1392 = vmatpush1.bf16.msra.mxu0 %v2784_v36  ;;  %1475 = vmatprep.subr.bf16.mxu1 %v2795_v39  ;;  %v2946_v36 = vld [vmem:[#allocation7] ss:$8 sps:$4 sm:$0xff]  }
  0xa7   :  { %1393 = vmatprep.subr.bf16.mxu0 %v2792_v38  ;;  %v2951_v38 = vld [vmem:[#allocation7 + $0x14] ss:$8 sps:$4 sm:$0xff]   ;;  %v2868_v39 = vld [vmem:[#allocation5 + $0x2e8] ss:$16 sps:$4 sm:$0xff]  }
  0xa9   :  { %1476 = vmatpush1.bf16.msra.mxu1 %v2793_v41  ;;  %v2873_v41 = vld [vmem:[#allocation5 + $0x30c] ss:$16 sps:$4 sm:$0xff]  }
  0xaa   :  { %1394 = vmatpush1.bf16.msra.mxu0 %v2790_v40  ;;  %1477 = vmatprep.subr.bf16.mxu1 %v2801_v43  ;;  %v2949_v40 = vld [vmem:[#allocation7 + $0x10] ss:$8 sps:$4 sm:$0xff]  }
  0xab   :  { %1395 = vmatprep.subr.bf16.mxu0 %v2798_v42  ;;  %v2954_v42 = vld [vmem:[#allocation7 + $0x24] ss:$8 sps:$4 sm:$0xff]   ;;  %v2871_v43 = vld [vmem:[#allocation5 + $0x308] ss:$16 sps:$4 sm:$0xff]  }
  0xad   :  { %1478 = vmatpush1.bf16.msra.mxu1 %v2799_v45  ;;  %v2876_v45 = vld [vmem:[#allocation5 + $0x32c] ss:$16 sps:$4 sm:$0xff]  }
  0xae   :  { %1396 = vmatpush1.bf16.msra.mxu0 %v2796_v44  ;;  %1479 = vmatprep.subr.bf16.mxu1 %v2807_v47  ;;  %v2952_v44 = vld [vmem:[#allocation7 + $0x20] ss:$8 sps:$4 sm:$0xff]  }
  0xaf   :  { %1397 = vmatprep.subr.bf16.mxu0 %v2804_v46  ;;  %v2957_v46 = vld [vmem:[#allocation7 + $0x34] ss:$8 sps:$4 sm:$0xff]   ;;  %v2874_v47 = vld [vmem:[#allocation5 + $0x328] ss:$16 sps:$4 sm:$0xff]  }
  0xb1   :  { %1480 = vmatpush1.bf16.msra.mxu1 %v2805_v49  ;;  %v2879_v49 = vld [vmem:[#allocation5 + $0x34c] ss:$16 sps:$4 sm:$0xff]  }
  0xb2   :  { %1398 = vmatpush1.bf16.msra.mxu0 %v2802_v48  ;;  %1481 = vmatprep.subr.bf16.mxu1 %v2813_v51  ;;  %v2955_v48 = vld [vmem:[#allocation7 + $0x30] ss:$8 sps:$4 sm:$0xff]  }
  0xb3   :  { %1399 = vmatprep.subr.bf16.mxu0 %v2810_v50  ;;  %v2960_v50 = vld [vmem:[#allocation7 + $0x44] ss:$8 sps:$4 sm:$0xff]   ;;  %v2877_v51 = vld [vmem:[#allocation5 + $0x348] ss:$16 sps:$4 sm:$0xff]  }
  0xb5   :  { %1482 = vmatpush1.bf16.msra.mxu1 %v2811_v54  ;;  %v2882_v54 = vld [vmem:[#allocation5 + $0x36c] ss:$16 sps:$4 sm:$0xff]  }
  0xb6   :  { %1400 = vmatpush1.bf16.msra.mxu0 %v2808_v53  ;;  %1483 = vmatprep.subr.bf16.mxu1 %v2819_v56  ;;  %v2958_v53 = vld [vmem:[#allocation7 + $0x40] ss:$8 sps:$4 sm:$0xff]  }
  0xb7   :  { %1401 = vmatprep.subr.bf16.mxu0 %v2816_v55  ;;  %v2963_v55 = vld [vmem:[#allocation7 + $0x54] ss:$8 sps:$4 sm:$0xff]   ;;  %v2880_v56 = vld [vmem:[#allocation5 + $0x368] ss:$16 sps:$4 sm:$0xff]  }
  0xb9   :  { %1484 = vmatpush1.bf16.msra.mxu1 %v2817_v58  ;;  %v2885_v58 = vld [vmem:[#allocation5 + $0x38c] ss:$16 sps:$4 sm:$0xff]  }
  0xba   :  { %1402 = vmatpush1.bf16.msra.mxu0 %v2814_v57  ;;  %1485 = vmatprep.subr.bf16.mxu1 %v2825_v60  ;;  %v2961_v57 = vld [vmem:[#allocation7 + $0x50] ss:$8 sps:$4 sm:$0xff]  }
  0xbb   :  { %1403 = vmatprep.subr.bf16.mxu0 %v2822_v59  ;;  %v2966_v59 = vld [vmem:[#allocation7 + $0x64] ss:$8 sps:$4 sm:$0xff]   ;;  %v2883_v60 = vld [vmem:[#allocation5 + $0x388] ss:$16 sps:$4 sm:$0xff]  }
  0xbd   :  { %1486 = vmatpush1.bf16.msra.mxu1 %v2823_v62  ;;  %v2888_v62 = vld [vmem:[#allocation5 + $0x3ac] ss:$16 sps:$4 sm:$0xff]  }
  0xbe   :  { %1404 = vmatpush1.bf16.msra.mxu0 %v2820_v61  ;;  %1487 = vmatprep.subr.bf16.mxu1 %v2831_v0  ;;  %v2964_v61 = vld [vmem:[#allocation7 + $0x60] ss:$8 sps:$4 sm:$0xff]  }
  0xbf   :  { %1405 = vmatprep.subr.bf16.mxu0 %v2828_v63  ;;  %v2969_v63 = vld [vmem:[#allocation7 + $0x74] ss:$8 sps:$4 sm:$0xff]   ;;  %v2886_v0 = vld [vmem:[#allocation5 + $0x3a8] ss:$16 sps:$4 sm:$0xff]  }
  0xc1   :  { %1488 = vmatpush1.bf16.msra.mxu1 %v2829_v2  ;;  %v2891_v2 = vld [vmem:[#allocation5 + $0x3cc] ss:$16 sps:$4 sm:$0xff]  }
  0xc2   :  { %1406 = vmatpush1.bf16.msra.mxu0 %v2826_v1  ;;  %1489 = vmatprep.subr.bf16.mxu1 %v2837_v4  ;;  %v2967_v1 = vld [vmem:[#allocation7 + $0x70] ss:$8 sps:$4 sm:$0xff]  }
  0xc3   :  { %1407 = vmatprep.subr.bf16.mxu0 %v2834_v3  ;;  %v2972_v3 = vld [vmem:[#allocation7 + $0x84] ss:$8 sps:$4 sm:$0xff]   ;;  %v2889_v4 = vld [vmem:[#allocation5 + $0x3c8] ss:$16 sps:$4 sm:$0xff]  }
  0xc5   :  { %1490 = vmatpush1.bf16.msra.mxu1 %v2835_v6  ;;  %v2894_v6 = vld [vmem:[#allocation5 + $0x3ec] ss:$16 sps:$4 sm:$0xff]  }
  0xc6   :  { %1408 = vmatpush1.bf16.msra.mxu0 %v2832_v5  ;;  %1491 = vmatprep.subr.bf16.mxu1 %v2843_v9  ;;  %v2970_v5 = vld [vmem:[#allocation7 + $0x80] ss:$8 sps:$4 sm:$0xff]  }
  0xc7   :  { %1409 = vmatprep.subr.bf16.mxu0 %v2840_v7  ;;  %v2975_v7 = vld [vmem:[#allocation7 + $0x94] ss:$8 sps:$4 sm:$0xff]   ;;  %v2892_v9 = vld [vmem:[#allocation5 + $0x3e8] ss:$16 sps:$4 sm:$0xff]  }
  0xc9   :  { %1492 = vmatpush1.bf16.msra.mxu1 %v2841_v12  ;;  %v2897_v12 = vld [vmem:[#allocation5 + $0x40c] ss:$16 sps:$4 sm:$0xff]  }
  0xca   :  { %1410 = vmatpush1.bf16.msra.mxu0 %v2838_v10  ;;  %1502 = vmatprep.subr.bf16.mxu1 %v2846_v14  ;;  %v2973_v10 = vld [vmem:[#allocation7 + $0x90] ss:$8 sps:$4 sm:$0xff]  }
  0xcb   :  { %1420 = vmatprep.subr.bf16.mxu0 %v2852_v15  ;;  %v2895_v14 = vld [vmem:[#allocation5 + $0x408] ss:$16 sps:$4 sm:$0xff]   ;;  %v2900_v15 = vld [vmem:[#allocation5 + $0x42c] ss:$16 sps:$4 sm:$0xff]  }
  0xcc   :  { %1494 = vmatmul.mubr.bf16.vlgmr.msra.gmra.mrb[4].mxu1 %v3282_v8  ;;  %v2861_v8 = vld [vmem:[#allocation5 + $0x28c] ss:$16 sps:$4 sm:$0xff]  }
  0xcd   :  { %1412 = vmatmul.mubr.bf16.vlgmr.msra.gmra.mrb[0].mxu0 %v3292_v16  ;;  %1503 = vmatpush1.bf16.msra.mxu1 %v2844_v17  ;;  %v2976_v17 = vld [vmem:[#allocation7 + $0xa0] ss:$8 sps:$4 sm:$0xff]  }
  0xce   :  { %1421 = vmatpush1.bf16.msra.mxu0 %v2850_v18  ;;  %1504 = vmatprep.subr.bf16.mxu1 %v2849_v19  ;;  %v2981_v18 = vld [vmem:[#allocation7 + $0xb4] ss:$8 sps:$4 sm:$0xff]   ;;  %v2898_v19 = vld [vmem:[#allocation5 + $0x428] ss:$16 sps:$4 sm:$0xff]  }
  0xcf   :  { %1452 = vmatprep.mubr.bf16.mxu0 %v3186_v23  ;;  %1534 = vmatprep.mubr.bf16.mxu1 %v3278_v52  ;;  %v2867_v52 = vld [vmem:[#allocation5 + $0x2cc] ss:$16 sps:$4 sm:$0xff]  }
  0xd0   :  { %1584 = vmatprep.subr.bf16.mxu0 %v2942_v20  ;;  %v2903_v20 = vld [vmem:[#allocation5 + $0x44c] ss:$16 sps:$4 sm:$0xff]  }
  0xd1   :  { %1505 = vmatpush1.bf16.msra.mxu1 %v2847_v21  ;;  %v2979_v21 = vld [vmem:[#allocation7 + $0xb0] ss:$8 sps:$4 sm:$0xff]  }
  0xd2   :  { %1506 = vmatprep.subr.bf16.mxu1 %v2855_v22  ;;  %v2984_v22 = vld [vmem:[#allocation7 + $0xc4] ss:$8 sps:$4 sm:$0xff]  }
  0xd5   :  { %1507 = vmatpush1.bf16.msra.mxu1 %v2853_v24  ;;  %v2906_v24 = vld [vmem:[#allocation5 + $0x46c] ss:$16 sps:$4 sm:$0xff]  }
  0xd6   :  { %1508 = vmatprep.subr.bf16.mxu1 %v2858_v26  ;;  %v2987_v26 = vld [vmem:[#allocation7 + $0xd4] ss:$8 sps:$4 sm:$0xff]  }
  0xd9   :  { %2505 = vmatmul.mubr.msk.bf16.vlgmr.msra.gmra.mrb[0].mxu0 %vm1293_vm0, %v94_v29  ;;  %1509 = vmatpush1.bf16.msra.mxu1 %v2856_v27  ;;  %v2909_v27 = vld [vmem:[#allocation5 + $0x48c] ss:$16 sps:$4 sm:$0xff]  }
  0xda   :  { %1585 = vmatpush1.bf16.msra.mxu0 %v2940_v28  ;;  %1510 = vmatprep.subr.bf16.mxu1 %v2861_v8  ;;  %v2907_v28 = vld [vmem:[#allocation5 + $0x488] ss:$16 sps:$4 sm:$0xff]  }
  0xdb   :  { %1616 = vmatprep.mubr.bf16.mxu0 %v3186_v23  ;;  %2029 = vmatprep.subr.bf16.mxu0 %v2948_v37  ;;  %v2901_v23 = vld [vmem:[#allocation5 + $0x448] ss:$16 sps:$4 sm:$0xff]   ;;  %v2990_v37 = vld [vmem:[#allocation7 + $0xe4] ss:$8 sps:$4 sm:$0xff]  }
  0xdc   :  { %v2910_v8 = vld [vmem:[#allocation5 + $0x4a8] ss:$16 sps:$4 sm:$0xff]  }
  0xdd   :  { %1511 = vmatpush1.bf16.msra.mxu1 %v2859_v30  ;;  %v2915_v30 = vld [vmem:[#allocation5 + $0x4cc] ss:$16 sps:$4 sm:$0xff]  }
  0xde   :  { %1512 = vmatprep.subr.bf16.mxu1 %v2864_v31  ;;  %v2913_v31 = vld [vmem:[#allocation5 + $0x4c8] ss:$16 sps:$4 sm:$0xff]  }
  0xe1   :  { %2506 = vmatmul.mubr.msk.bf16.vlgmr.msra.gmra.mrb[4].mxu0 %vm1293_vm0, %v94_v29  ;;  %1513 = vmatpush1.bf16.msra.mxu1 %v2862_v32  ;;  %v2912_v29 = vld [vmem:[#allocation5 + $0x4ac] ss:$16 sps:$4 sm:$0xff]  }
  0xe2   :  { %1514 = vmatprep.subr.bf16.mxu1 %v2867_v52  ;;  %2030 = vmatpush1.bf16.msra.mxu0 %v2946_v36  ;;  %v2918_v32 = vld [vmem:[#allocation5 + $0x4ec] ss:$16 sps:$4 sm:$0xff]   ;;  %v2916_v52 = vld [vmem:[#allocation5 + $0x4e8] ss:$16 sps:$4 sm:$0xff]  }
  0xe3   :  { %2031 = vmatprep.subr.bf16.mxu0 %v2951_v38  ;;  %v2924_v36 = vld [vmem:[#allocation5 + $0x52c] ss:$16 sps:$4 sm:$0xff]   ;;  %v2988_v38 = vld [vmem:[#allocation7 + $0xe0] ss:$8 sps:$4 sm:$0xff]  }
  0xe5   :  { %1515 = vmatpush1.bf16.msra.mxu1 %v2865_v33  ;;  %v2921_v33 = vld [vmem:[#allocation5 + $0x50c] ss:$16 sps:$4 sm:$0xff]  }
  0xe6   :  { %1516 = vmatprep.subr.bf16.mxu1 %v2870_v34  ;;  %2032 = vmatpush1.bf16.msra.mxu0 %v2949_v40  ;;  %v2919_v34 = vld [vmem:[#allocation5 + $0x508] ss:$16 sps:$4 sm:$0xff]   ;;  %v2927_v40 = vld [vmem:[#allocation5 + $0x54c] ss:$16 sps:$4 sm:$0xff]  }
  0xe7   :  { %2033 = vmatprep.subr.bf16.mxu0 %v2954_v42  ;;  %v2991_v42 = vld [vmem:[#allocation7 + $0xf0] ss:$8 sps:$4 sm:$0xff]  }
  0xe9   :  { %1517 = vmatpush1.bf16.msra.mxu1 %v2868_v39  ;;  %v2922_v39 = vld [vmem:[#allocation5 + $0x528] ss:$16 sps:$4 sm:$0xff]  }
  0xea   :  { %1518 = vmatprep.subr.bf16.mxu1 %v2873_v41  ;;  %2034 = vmatpush1.bf16.msra.mxu0 %v2952_v44  ;;  %v2993_v41 = vld [vmem:[#allocation7 + $0xf4] ss:$8 sps:$4 sm:$0xff]  }
  0xeb   :  { %2035 = vmatprep.subr.bf16.mxu0 %v2957_v46  ;;  %v2930_v44 = vld [vmem:[#allocation5 + $0x56c] ss:$16 sps:$4 sm:$0xff]   ;;  %v2928_v46 = vld [vmem:[#allocation5 + $0x568] ss:$16 sps:$4 sm:$0xff]  }
  0xed   :  { %1519 = vmatpush1.bf16.msra.mxu1 %v2871_v43  ;;  %v2925_v43 = vld [vmem:[#allocation5 + $0x548] ss:$16 sps:$4 sm:$0xff]  }
  0xee   :  { %1520 = vmatprep.subr.bf16.mxu1 %v2876_v45  ;;  %2036 = vmatpush1.bf16.msra.mxu0 %v2955_v48  ;;  %v2996_v45 = vld [vmem:[#allocation7 + $0x104] ss:$8 sps:$4 sm:$0xff]   ;;  %v2931_v48 = vld [vmem:[#allocation5 + $0x588] ss:$16 sps:$4 sm:$0xff]  }
  0xef   :  { %2037 = vmatprep.subr.bf16.mxu0 %v2960_v50  ;;  %v2934_v50 = vld [vmem:[#allocation5 + $0x5a8] ss:$16 sps:$4 sm:$0xff]  }
  0xf1   :  { %1521 = vmatpush1.bf16.msra.mxu1 %v2874_v47  ;;  %v2933_v47 = vld [vmem:[#allocation5 + $0x58c] ss:$16 sps:$4 sm:$0xff]  }
  0xf2   :  { %1522 = vmatprep.subr.bf16.mxu1 %v2879_v49  ;;  %2038 = vmatpush1.bf16.msra.mxu0 %v2958_v53  ;;  %v2936_v49 = vld [vmem:[#allocation5 + $0x5ac] ss:$16 sps:$4 sm:$0xff]   ;;  %v2937_v53 = vld [vmem:[#allocation5 + $0x5c8] ss:$16 sps:$4 sm:$0xff]  }
  0xf3   :  { %2039 = vmatprep.subr.bf16.mxu0 %v2963_v55  ;;  %v2943_v55 = vld [vmem:[#allocation5 + $0x5e8] ss:$16 sps:$4 sm:$0xff]  }
  0xf5   :  { %1523 = vmatpush1.bf16.msra.mxu1 %v2877_v51  ;;  %v2939_v51 = vld [vmem:[#allocation5 + $0x5cc] ss:$16 sps:$4 sm:$0xff]  }
  0xf6   :  { %1524 = vmatprep.subr.bf16.mxu1 %v2882_v54  ;;  %2040 = vmatpush1.bf16.msra.mxu0 %v2961_v57  ;;  %v2945_v54 = vld [vmem:[#allocation5 + $0x5ec] ss:$16 sps:$4 sm:$0xff]  }
  0xf7   :  { %2041 = vmatprep.subr.bf16.mxu0 %v2966_v59 }
  0xf9   :  { %1525 = vmatpush1.bf16.msra.mxu1 %v2880_v56 }
  0xfa   :  { %1526 = vmatprep.subr.bf16.mxu1 %v2885_v58  ;;  %2042 = vmatpush1.bf16.msra.mxu0 %v2964_v61 }
  0xfb   :  { %2043 = vmatprep.subr.bf16.mxu0 %v2969_v63  ;;  %v3306_v63 = vld [vmem:[%s3349_s2] sm:$0xf] }
  0xfd   :  { %1527 = vmatpush1.bf16.msra.mxu1 %v2883_v60  ;;  %v293_v60 = vlaneseq }
  0xfe   :  { %1528 = vmatprep.subr.bf16.mxu1 %v2888_v62  ;;  %2044 = vmatpush1.bf16.msra.mxu0 %v2967_v1 }
  0xff   :  { %2045 = vmatprep.subr.bf16.mxu0 %v2972_v3  ;;  %v3300_v61 = vshrl.u32 %v293_v60, 7  ;;  %v3042_v3 = vld [vmem:[#allocation8 + $0x40] sm:$0xff]   ;;  %v3041_v60 = vld [vmem:[#allocation7 + $0x1f4] ss:$8 sps:$4 sm:$0xff]  }
 0x101   :  { %1529 = vmatpush1.bf16.msra.mxu1 %v2886_v0  ;;  %v295_v62 = vsub.s32 0, %v3300_v61  ;;  %v299_v0 = vsub.s32 1, %v3300_v61 }
 0x102   :  { %1530 = vmatprep.subr.bf16.mxu1 %v2891_v2  ;;  %2046 = vmatpush1.bf16.msra.mxu0 %v2970_v5  ;;  %v3044_v5 = vld [vmem:[#allocation8 + $0x48] sm:$0xff]  }
 0x103   :  { %2047 = vmatprep.subr.bf16.mxu0 %v2975_v7  ;;  %v300_v1 = vrot.slane %v3306_v63, %v299_v0 }
 0x105   :  { %1531 = vmatpush1.bf16.msra.mxu1 %v2889_v4  ;;  %v3043_v4 = vld [vmem:[#allocation8] sm:$0xff]  }
 0x106   :  { %1532 = vmatprep.subr.bf16.mxu1 %v2894_v6  ;;  %2048 = vmatpush1.bf16.msra.mxu0 %v2973_v10 }
 0x107   :  { %2049 = vmatprep.subr.bf16.mxu0 %v2978_v13 }
 0x109   :  { %1533 = vmatpush1.bf16.msra.mxu1 %v2892_v9 }
 0x10a   :  { %1543 = vmatprep.subr.bf16.mxu1 %v2897_v12  ;;  %2050 = vmatpush1.bf16.msra.mxu0 %v2976_v17 }
 0x10b   :  { %2051 = vmatprep.subr.bf16.mxu0 %v2981_v18  ;;  %v3046_v18 = vld [vmem:[#allocation8 + $0x50] sm:$0xff]  }
 0x10c   :  { %1535 = vmatmul.mubr.bf16.vlgmr.msra.gmra.mrb[4].mxu1 %v3284_v11  ;;  %v2904_v11 = vld [vmem:[#allocation5 + $0x468] ss:$16 sps:$4 sm:$0xff]  }
 0x10d   :  { %1544 = vmatpush1.bf16.msra.mxu1 %v2895_v14  ;;  %1575 = vmatprep.mubr.bf16.mxu1 %v3289_v35  ;;  %v2985_v35 = vld [vmem:[#allocation7 + $0xd0] ss:$8 sps:$4 sm:$0xff]   ;;  %v3045_v14 = vld [vmem:[#allocation8 + $0x8] sm:$0xff]  }
 0x10e   :  { %1545 = vmatprep.subr.bf16.mxu1 %v2900_v15  ;;  %2052 = vmatpush1.bf16.msra.mxu0 %v2979_v21  ;;  %v2994_v21 = vld [vmem:[#allocation7 + $0x100] ss:$8 sps:$4 sm:$0xff]  }
 0x10f   :  { %2053 = vmatprep.subr.bf16.mxu0 %v2984_v22  ;;  %v3047_v22 = vld [vmem:[#allocation8 + $0x10] sm:$0xff]  }
 0x111   :  { %1546 = vmatpush1.bf16.msra.mxu1 %v2898_v19 }
 0x112   :  { %1547 = vmatprep.subr.bf16.mxu1 %v2903_v20  ;;  %2054 = vmatpush1.bf16.msra.mxu0 %v2982_v25  ;;  %v3048_v25 = vld [vmem:[#allocation8 + $0x58] sm:$0xff]  }
 0x113   :  { %2055 = vmatprep.subr.bf16.mxu0 %v2987_v26 }
 0x115   :  { %1548 = vmatpush1.bf16.msra.mxu1 %v2901_v23 }
 0x116   :  { %1549 = vmatprep.subr.bf16.mxu1 %v2906_v24  ;;  %2056 = vmatpush1.bf16.msra.mxu0 %v2985_v35  ;;  %v2999_v24 = vld [vmem:[#allocation7 + $0x114] ss:$8 sps:$4 sm:$0xff]  }
 0x117   :  { %2057 = vmatprep.subr.bf16.mxu0 %v2990_v37  ;;  %v3008_v37 = vld [vmem:[#allocation7 + $0x144] ss:$8 sps:$4 sm:$0xff]  }
 0x119   :  { %1550 = vmatpush1.bf16.msra.mxu1 %v2904_v11 }
 0x11a   :  { %1551 = vmatprep.subr.bf16.mxu1 %v2909_v27  ;;  %2058 = vmatpush1.bf16.msra.mxu0 %v2988_v38  ;;  %v2997_v27 = vld [vmem:[#allocation7 + $0x110] ss:$8 sps:$4 sm:$0xff]   ;;  %v3006_v38 = vld [vmem:[#allocation7 + $0x140] ss:$8 sps:$4 sm:$0xff]  }
 0x11b   :  { %2059 = vmatprep.subr.bf16.mxu0 %v2993_v41  ;;  %v3014_v41 = vld [vmem:[#allocation7 + $0x164] ss:$8 sps:$4 sm:$0xff]  }
 0x11d   :  { %1552 = vmatpush1.bf16.msra.mxu1 %v2907_v28  ;;  %v3049_v28 = vld [vmem:[#allocation8 + $0x18] sm:$0xff]  }
 0x11e   :  { %1553 = vmatprep.subr.bf16.mxu1 %v2912_v29  ;;  %2060 = vmatpush1.bf16.msra.mxu0 %v2991_v42  ;;  %v3002_v29 = vld [vmem:[#allocation7 + $0x124] ss:$8 sps:$4 sm:$0xff]   ;;  %v3012_v42 = vld [vmem:[#allocation7 + $0x160] ss:$8 sps:$4 sm:$0xff]  }
 0x11f   :  { %2070 = vmatprep.subr.bf16.mxu0 %v2996_v45  ;;  %v3020_v45 = vld [vmem:[#allocation7 + $0x184] ss:$8 sps:$4 sm:$0xff]  }
 0x121   :  { %1554 = vmatpush1.bf16.msra.mxu1 %v2910_v8 }
 0x122   :  { %1555 = vmatprep.subr.bf16.mxu1 %v2915_v30  ;;  %v3050_v30 = vld [vmem:[#allocation8 + $0x60] sm:$0xff]  }
 0x125   :  { %1556 = vmatpush1.bf16.msra.mxu1 %v2913_v31  ;;  %v3000_v31 = vld [vmem:[#allocation7 + $0x120] ss:$8 sps:$4 sm:$0xff]  }
 0x126   :  { %1557 = vmatprep.subr.bf16.mxu1 %v2918_v32  ;;  %v3051_v32 = vld [vmem:[#allocation8 + $0x20] sm:$0xff]  }
 0x129   :  { %1558 = vmatpush1.bf16.msra.mxu1 %v2916_v52  ;;  %v3005_v52 = vld [vmem:[#allocation7 + $0x134] ss:$8 sps:$4 sm:$0xff]  }
 0x12a   :  { %1559 = vmatprep.subr.bf16.mxu1 %v2921_v33  ;;  %v3052_v33 = vld [vmem:[#allocation8 + $0x68] sm:$0xff]  }
 0x12d   :  { %1560 = vmatpush1.bf16.msra.mxu1 %v2919_v34  ;;  %v3003_v34 = vld [vmem:[#allocation7 + $0x130] ss:$8 sps:$4 sm:$0xff]  }
 0x12e   :  { %1561 = vmatprep.subr.bf16.mxu1 %v2924_v36  ;;  %v3053_v36 = vld [vmem:[#allocation8 + $0x28] sm:$0xff]  }
 0x131   :  { %1562 = vmatpush1.bf16.msra.mxu1 %v2922_v39  ;;  %v3011_v39 = vld [vmem:[#allocation7 + $0x154] ss:$8 sps:$4 sm:$0xff]  }
 0x132   :  { %1563 = vmatprep.subr.bf16.mxu1 %v2927_v40  ;;  %v3009_v40 = vld [vmem:[#allocation7 + $0x150] ss:$8 sps:$4 sm:$0xff]  }
 0x135   :  { %1564 = vmatpush1.bf16.msra.mxu1 %v2925_v43  ;;  %v3017_v43 = vld [vmem:[#allocation7 + $0x174] ss:$8 sps:$4 sm:$0xff]  }
 0x136   :  { %1565 = vmatprep.subr.bf16.mxu1 %v2930_v44  ;;  %v3015_v44 = vld [vmem:[#allocation7 + $0x170] ss:$8 sps:$4 sm:$0xff]  }
 0x139   :  { %1566 = vmatpush1.bf16.msra.mxu1 %v2928_v46  ;;  %v3018_v46 = vld [vmem:[#allocation7 + $0x180] ss:$8 sps:$4 sm:$0xff]  }
 0x13a   :  { %1567 = vmatprep.subr.bf16.mxu1 %v2933_v47  ;;  %v3023_v47 = vld [vmem:[#allocation7 + $0x194] ss:$8 sps:$4 sm:$0xff]  }
 0x13d   :  { %1568 = vmatpush1.bf16.msra.mxu1 %v2931_v48  ;;  %v3021_v48 = vld [vmem:[#allocation7 + $0x190] ss:$8 sps:$4 sm:$0xff]  }
 0x13e   :  { %1569 = vmatprep.subr.bf16.mxu1 %v2936_v49  ;;  %v3026_v49 = vld [vmem:[#allocation7 + $0x1a4] ss:$8 sps:$4 sm:$0xff]  }
 0x141   :  { %1570 = vmatpush1.bf16.msra.mxu1 %v2934_v50  ;;  %v3024_v50 = vld [vmem:[#allocation7 + $0x1a0] ss:$8 sps:$4 sm:$0xff]  }
 0x142   :  { %1571 = vmatprep.subr.bf16.mxu1 %v2939_v51  ;;  %v3029_v51 = vld [vmem:[#allocation7 + $0x1b4] ss:$8 sps:$4 sm:$0xff]  }
 0x145   :  { %1572 = vmatpush1.bf16.msra.mxu1 %v2937_v53  ;;  %v3027_v53 = vld [vmem:[#allocation7 + $0x1b0] ss:$8 sps:$4 sm:$0xff]  }
 0x146   :  { %1573 = vmatprep.subr.bf16.mxu1 %v2945_v54  ;;  %v3032_v54 = vld [vmem:[#allocation7 + $0x1c4] ss:$8 sps:$4 sm:$0xff]  }
 0x149   :  { %1574 = vmatpush1.bf16.msra.mxu1 %v2943_v55  ;;  %v3030_v55 = vld [vmem:[#allocation7 + $0x1c0] ss:$8 sps:$4 sm:$0xff]  }
 0x14a   :  { %2588 = vmatprep.subr.bf16.mxu1 %v3042_v3 }
 0x14c   :  { %1576 = vmatmul.mubr.bf16.vlgmr.msra.gmra.mrb[4].mxu1 %v3292_v16  ;;  %v296_v16 = vrot.slane %v3306_v63, %v295_v62 }
 0x14d   :  { %2589 = vmatpush3.bf16.msra.mxu1 %v3043_v4 }
 0x14e   :  { %2590 = vmatprep.subr.bf16.mxu1 %v3044_v5 }
 0x151   :  { %2591 = vmatpush3.bf16.msra.mxu1 %v3045_v14 }
 0x152   :  { %2592 = vmatprep.subr.bf16.mxu1 %v3046_v18 }
 0x155   :  { %2593 = vmatpush3.bf16.msra.mxu1 %v3047_v22  ;;  %v3057_v22 = vld [vmem:[#allocation8 + $0x38] sm:$0xff]  }
 0x156   :  { %2594 = vmatprep.subr.bf16.mxu1 %v3048_v25 }
 0x159   :  { %2595 = vmatpush3.bf16.msra.mxu1 %v3049_v28 }
 0x15a   :  { %2596 = vmatprep.subr.bf16.mxu1 %v3050_v30 }
 0x15d   :  { %2597 = vmatpush3.bf16.msra.mxu1 %v3051_v32 }
 0x15e   :  { %2598 = vmatprep.subr.bf16.mxu1 %v3052_v33 }
 0x15f   :  { %v1331_v56 = vpop.f32.mrb[0].mxu1 }
 0x160   :  { %v1333_v57 = vpop.f32.mrb[1].mxu1  ;;  %v1332_v2 = vadd.f32 %v1331_v56, %v296_v16  ;;  %v3035_v56 = vld [vmem:[#allocation7 + $0x1d4] ss:$8 sps:$4 sm:$0xff]   ;;  %v3039_v16 = vld [vmem:[#allocation7 + $0x1f0] ss:$8 sps:$4 sm:$0xff]  }
 0x161   :  { %v1335_v58 = vpop.f32.mrb[2].mxu1  ;;  %v1334_v6 = vadd.f32 %v1333_v57, %v300_v1  ;;  %2599 = vmatpush3.bf16.msra.mxu1 %v3053_v36  ;;  %v3033_v57 = vld [vmem:[#allocation7 + $0x1d0] ss:$8 sps:$4 sm:$0xff]   ;;  %v303_v1 = vsub.s32 2, %v3300_v61 }
 0x162   :  { %v1336_v59 = vpop.f32.mrb[3].mxu1  ;;  %v3038_v58 = vld [vmem:[#allocation7 + $0x1e4] ss:$8 sps:$4 sm:$0xff]  }
 0x163   :  { %v3036_v59 = vld [vmem:[#allocation7 + $0x1e0] ss:$8 sps:$4 sm:$0xff]   ;;  %v304_v3 = vrot.slane %v3306_v63, %v303_v1 }
 0x1ac   :  { %v1454_v7 = vpop.f32.mrb[0].mxu0 }
 0x1ad   :  { %v2611_v9 = vadd.f32 %v1454_v7, %v1332_v2  ;;  %v1456_v10 = vpop.f32.mrb[1].mxu0  ;;  %v307_v2 = vsub.s32 3, %v3300_v61 }
 0x1ae   :  { %v2613_v12 = vadd.f32 %v1456_v10, %v1334_v6  ;;  %v1458_v13 = vpop.f32.mrb[2].mxu0 }
 0x1af   :  { %v1625_v15 = vmax.f32 %v2611_v9, 0.0  ;;  %v1459_v17 = vpop.f32.mrb[3].mxu0  ;;  %v308_v4 = vrot.slane %v3306_v63, %v307_v2  ;;  %v3056_v63 = vld [vmem:[#allocation8 + $0x78] sm:$0xff]  }
 0x1b0   :  { %v1626_v19 = vmax.f32 %v2613_v12, 0.0 }
 0x1b1   :  { %v1629_v23 = vpack.c.bf16 %v1625_v15, %v1625_v15 }
 0x1b2   :  { %v1630_v20 = vpack.c.bf16 %v1626_v19, %v1626_v19 }
 0x1b4   :  { %2061 = vmatprep.mubr.bf16.mxu0 %v1630_v20  ;;  %v3315_v26 = vpop.f32.mrb[4].mxu0  ;;  %v3054_v20 = vld [vmem:[#allocation8 + $0x70] sm:$0xff]  }
 0x1b5   :  { %2062 = vmatmul.mubr.bf16.vlgmr.msra.gmra.mrb[8].mxu0 %v1629_v23  ;;  %v3317_v11 = vpop.f32.mrb[5].mxu0  ;;  %2600 = vmatprep.subr.bf16.mxu1 %v3054_v20  ;;  %v1697_v23 = vld [vmem:[%s3351_s4] sm:$0x3] }
 0x1b6   :  { %2071 = vmatpush1.bf16.msra.mxu0 %v2994_v21  ;;  %v1622_v35 = vpop.f32.mrb[6].mxu0  ;;  %v3055_v21 = vld [vmem:[#allocation8 + $0x30] sm:$0xff]   ;;  %v1706_v25 = vrot.slane %v1697_v23, %v299_v0 }
 0x1b7   :  { %2072 = vmatprep.subr.bf16.mxu0 %v2999_v24  ;;  %v1623_v8 = vpop.f32.mrb[7].mxu0  ;;  %2601 = vmatpush3.bf16.msra.mxu1 %v3055_v21  ;;  %v1702_v24 = vrot.slane %v1697_v23, %v295_v62  ;;  %v2571_v62 = vld [vmem:[%s3353_s6] ss:$0 sm:$0xff] }
 0x1b8   :  { %2602 = vmatprep.subr.bf16.mxu1 %v3056_v63 }
 0x1ba   :  { %2073 = vmatpush1.bf16.msra.mxu0 %v2997_v27 }
 0x1bb   :  { %2074 = vmatprep.subr.bf16.mxu0 %v3002_v29  ;;  %2603 = vmatpush3.bf16.msra.mxu1 %v3057_v22 }
 0x1be   :  { %2075 = vmatpush1.bf16.msra.mxu0 %v3000_v31 }
 0x1bf   :  { %2076 = vmatprep.subr.bf16.mxu0 %v3005_v52 }
 0x1c2   :  { %2077 = vmatpush1.bf16.msra.mxu0 %v3003_v34 }
 0x1c3   :  { %2078 = vmatprep.subr.bf16.mxu0 %v3008_v37 }
 0x1c6   :  { %2079 = vmatpush1.bf16.msra.mxu0 %v3006_v38 }
 0x1c7   :  { %2080 = vmatprep.subr.bf16.mxu0 %v3011_v39 }
 0x1ca   :  { %2081 = vmatpush1.bf16.msra.mxu0 %v3009_v40 }
 0x1cb   :  { %2082 = vmatprep.subr.bf16.mxu0 %v3014_v41 }
 0x1ce   :  { %2083 = vmatpush1.bf16.msra.mxu0 %v3012_v42 }
 0x1cf   :  { %2084 = vmatprep.subr.bf16.mxu0 %v3017_v43 }
 0x1d2   :  { %2085 = vmatpush1.bf16.msra.mxu0 %v3015_v44 }
 0x1d3   :  { %2086 = vmatprep.subr.bf16.mxu0 %v3020_v45 }
 0x1d6   :  { %2087 = vmatpush1.bf16.msra.mxu0 %v3018_v46 }
 0x1d7   :  { %2088 = vmatprep.subr.bf16.mxu0 %v3023_v47 }
 0x1da   :  { %2089 = vmatpush1.bf16.msra.mxu0 %v3021_v48 }
 0x1db   :  { %2090 = vmatprep.subr.bf16.mxu0 %v3026_v49 }
 0x1de   :  { %2091 = vmatpush1.bf16.msra.mxu0 %v3024_v50 }
 0x1df   :  { %2092 = vmatprep.subr.bf16.mxu0 %v3029_v51 }
 0x1e2   :  { %2093 = vmatpush1.bf16.msra.mxu0 %v3027_v53 }
 0x1e3   :  { %2094 = vmatprep.subr.bf16.mxu0 %v3032_v54 }
 0x1e6   :  { %2095 = vmatpush1.bf16.msra.mxu0 %v3030_v55 }
 0x1e7   :  { %2096 = vmatprep.subr.bf16.mxu0 %v3035_v56 }
 0x1ea   :  { %2097 = vmatpush1.bf16.msra.mxu0 %v3033_v57 }
 0x1eb   :  { %2098 = vmatprep.subr.bf16.mxu0 %v3038_v58 }
 0x1ee   :  { %2099 = vmatpush1.bf16.msra.mxu0 %v3036_v59 }
 0x1ef   :  { %2100 = vmatprep.subr.bf16.mxu0 %v3041_v60 }
 0x1f2   :  { %2101 = vmatpush1.bf16.msra.mxu0 %v3039_v16 }
 0x21f   :  { %v1577_v5 = vpop.f32.mrb[4].mxu1 }
 0x220   :  { %v2614_v6 = vadd.f32 %v1577_v5, %v304_v3  ;;  %v1579_v7 = vpop.f32.mrb[5].mxu1 }
 0x221   :  { %v2616_v9 = vadd.f32 %v1579_v7, %v308_v4  ;;  %v1581_v10 = vpop.f32.mrb[6].mxu1 }
 0x222   :  { %v2615_v12 = vadd.f32 %v2614_v6, %v3315_v26  ;;  %v1582_v13 = vpop.f32.mrb[7].mxu1 }
 0x223   :  { %v2617_v14 = vadd.f32 %v2616_v9, %v3317_v11 }
 0x224   :  { %v1627_v15 = vmax.f32 %v2615_v12, 0.0 }
 0x225   :  { %v1628_v17 = vmax.f32 %v2617_v14, 0.0 }
 0x226   :  { %v1631_v19 = vpack.c.bf16 %v1627_v15, %v1627_v15 }
 0x227   :  { %v1632_v18 = vpack.c.bf16 %v1628_v17, %v1628_v17 }
 0x229   :  { %2102 = vmatprep.mubr.bf16.mxu0 %v1632_v18 }
 0x22a   :  { %2103 = vmatmul.mubr.bf16.vlgmr.msra.gmra.mrb[8].mxu0 %v1631_v19 }
 0x2fd   :  { %v2104_v26 = vpop.f32.mrb[8].mxu0 }
 0x2fe   :  { %v2618_v11 = vadd.f32 %v2104_v26, %v1702_v24  ;;  %v2106_v27 = vpop.f32.mrb[9].mxu0 }
 0x2ff   :  { %v2619_v35 = vadd.f32 %v2106_v27, %v1706_v25  ;;  %v2108_v28 = vpop.f32.mrb[10].mxu0 }
 0x300   :  { %v2111_v29 = vmax.f32 %v2618_v11, 0.0  ;;  %v2109_v8 = vpop.f32.mrb[11].mxu0 }
 0x301   :  { %v2112_v30 = vmax.f32 %v2619_v35, 0.0 }
 0x302   :  { %v2113_v32 = vpack.c.bf16 %v2111_v29, %v2111_v29 }
 0x303   :  { %v2114_v31 = vpack.c.bf16 %v2112_v30, %v2112_v30 }
 0x305   :  { %2282 = vmatprep.mubr.bf16.mxu1 %v2114_v31 }
 0x306   :  { %2283 = vmatmul.mubr.bf16.vlgmr.msra.gmra.mrb[8].mxu1 %v2113_v32 }
 0x3d9   :  { %v2604_v52 = vpop.f32.mrb[8].mxu1 }
 0x3da   :  { %v2605_v33 = vpop.f32.mrb[9].mxu1 }
 0x3db   :  { %v2606_v61 = vadd.f32 %v2605_v33, %v2604_v52  ;;  %v2607_v0 = vpop.f32.mrb[10].mxu1 }
 0x3dc   :  { %v2608_v34 = vpop.f32.mrb[11].mxu1 }
 0x3dd   :  { %v2285_v36 = vadd.f32 %v2606_v61, %v2571_v62 }
 0x3df   :  { %v2290_v37 = vpack.c.bf16 %v2285_v36, %v2285_v36 }
 0x3e1   :  { %2291 = vst [vmem:[#allocation10] sm:$0xf] %v2290_v37 }
 0x3e2   :  { %3157 = shalt.err (!%p3154_p8)
}
 0x3e3   :  { %s3158_s6 = scalar_lea.hbm %s3354_s7, 64 }
 0x3e4   :  { %p3159_p9 = scmp.ne.s32.totalorder %s3354_s7, %s3158_s6  ;;  %p3162_p10 = scmp.lt.u32.totalorder %s3158_s6, %s3354_s7 }
 0x3e6   :  { %p3164_p11 = pnand %p3162_p10, %p3159_p9 }
 0x3e8   :  { %3167 = shalt.err (!%p3164_p11)
}
 0x3e9   :  { %2301 = dma.vmem_to_hbm [thread:$0]  %s2299_s9, 64, %s3354_s7, [#allocation4]  }
 0x3ea   :  { %3174 = dma.done.wait [#allocation4], 64  }
 0x3eb   :  { %3175 = vsyncadd [#allocation4], 4294967232 }
 0x3ec   :  { %2305 = vsyncpa [#allocation3], 1 }
 0x3ed   :  { %2306 = vsyncpa [#allocation6], 1 }
 0x3ee   :  { %2307 = vsyncpa [#allocation9], 1 }
 0x3ef   :  { %2308 = vsyncpa [#allocation4], 1 }

</bundles_post_ra>
